<compile_context>
chip_gen: v6e
topology: v6e:2x2x1
jax: 0.10.0
libtpu: 0.0.40
codegen_flags: <defaults>
</compile_context>

<pallas_src>
import functools

import jax
import jax.numpy as jnp
from jax.experimental import pallas as pl
from jax.experimental.pallas import tpu as pltpu

# Model constants (from LinkedSIR.__init__ — no learned weights).
BETA1 = 0.3
BETA2 = 0.2
GAMMA1 = 0.1
GAMMA2 = 0.1
MU12 = 0.01
MU21 = 0.01

LANE = 128          # TPU lane width
TILE_R = 128        # rows of 128 lanes per block -> (6, 128, 128) f32 = 384 KiB
_PALLAS_MIN_BATCH = 1024  # below this, fused XLA beats a Pallas launch


def _linked_sir_kernel(y_ref, o_ref):
    # y_ref / o_ref: (6, tile_r, 128) float32 blocks in VMEM, variable-major.
    # Each y_ref[v] is a dense (tile_r, 128) slab -> full-vreg elementwise ops.
    S1 = y_ref[0]
    I1 = y_ref[1]
    R1 = y_ref[2]
    S2 = y_ref[3]
    I2 = y_ref[4]
    R2 = y_ref[5]

    # One reciprocal per population (hoisted); approx=False == exact divide.
    inv_N1 = pl.reciprocal(S1 + I1 + R1, approx=False)
    inv_N2 = pl.reciprocal(S2 + I2 + R2, approx=False)
    inf1 = BETA1 * S1 * I1 * inv_N1
    inf2 = BETA2 * S2 * I2 * inv_N2

    # Direct slab stores — no concatenate / sublane shuffles.
    o_ref[0] = -inf1 - MU12 * S1 + MU21 * S2
    o_ref[1] = inf1 - GAMMA1 * I1 - MU12 * I1 + MU21 * I2
    o_ref[2] = GAMMA1 * I1 - MU12 * R1 + MU21 * R2
    o_ref[3] = -inf2 - MU21 * S2 + MU12 * S1
    o_ref[4] = inf2 - GAMMA2 * I2 - MU21 * I2 + MU12 * I1
    o_ref[5] = GAMMA2 * I2 - MU21 * R2 + MU12 * R1


def linked_sir_rhs_soa(y_soa):
    """SIR RHS in struct-of-arrays layout.

    y_soa: (6, R, 128) float32 with variables [S1, I1, R1, S2, I2, R2] on the
    leading axis and the batch flattened into (R, 128).  Requires R <= TILE_R
    or R % TILE_R == 0.  Use this directly inside an ODE integration loop to
    keep the state SoA and avoid any per-step transposes.
    """
    six, R, lane = y_soa.shape
    if six != 6 or lane != LANE:
        raise ValueError(f"expected (6, R, {LANE}) SoA state, got {y_soa.shape}")
    if R <= TILE_R:
        tile_r, grid_n = R, 1
    else:
        if R % TILE_R != 0:
            raise ValueError(f"R={R} must be <= {TILE_R} or a multiple of {TILE_R}")
        tile_r, grid_n = TILE_R, R // TILE_R

    block = (6, tile_r, LANE)
    return pl.pallas_call(
        _linked_sir_kernel,
        out_shape=jax.ShapeDtypeStruct((6, R, LANE), jnp.float32),
        grid=(grid_n,),
        in_specs=[pl.BlockSpec(block, lambda i: (0, i, 0))],
        out_specs=pl.BlockSpec(block, lambda i: (0, i, 0)),
        compiler_params=pltpu.CompilerParams(
            dimension_semantics=("parallel",),      # megacore split on v7x
            vmem_limit_bytes=32 * 1024 * 1024,      # explicit, with headroom
        ),
    )(y_soa)


def _linked_sir_rhs_xla(y2):
    """Pure-JAX path (mirrors the PyTorch forward exactly); used for small B."""
    S1, I1, R1, S2, I2, R2 = (y2[:, i] for i in range(6))
    N1 = S1 + I1 + R1
    N2 = S2 + I2 + R2
    dS1 = -BETA1 * S1 * I1 / N1 - MU12 * S1 + MU21 * S2
    dI1 = BETA1 * S1 * I1 / N1 - GAMMA1 * I1 - MU12 * I1 + MU21 * I2
    dR1 = GAMMA1 * I1 - MU12 * R1 + MU21 * R2
    dS2 = -BETA2 * S2 * I2 / N2 - MU21 * S2 + MU12 * S1
    dI2 = BETA2 * S2 * I2 / N2 - GAMMA2 * I2 - MU21 * I2 + MU12 * I1
    dR2 = GAMMA2 * I2 - MU21 * R2 + MU12 * R1
    return jnp.stack([dS1, dI1, dR1, dS2, dI2, dR2], axis=1)


@functools.partial(jax.jit, static_argnames=("use_pallas",))
def linked_sir_forward(t, y, *, use_pallas=None):
    """JAX/Pallas equivalent of LinkedSIR.forward(t, y).

    `t` is unused (matches the PyTorch module).  `y` is anything reshapeable to
    (-1, 6); returns (B, 6) float32 (== torch.stack([...], dim=1)).

    use_pallas: True/False to force the path; None = auto (Pallas only when the
    batch is large enough to amortize a kernel launch).
    """
    del t
    y2 = jnp.asarray(y, dtype=jnp.float32).reshape(-1, 6)   # (B, 6)
    B = y2.shape[0]
    if use_pallas is None:
        use_pallas = B >= _PALLAS_MIN_BATCH
    if not use_pallas:
        return _linked_sir_rhs_xla(y2)

    # One-time AoS -> SoA boundary conversion (pad with 1.0 so padded lanes
    # never hit a 0/0 divide; padded rows are sliced off below).
    r = pl.cdiv(B, LANE)
    r_pad = r if r <= TILE_R else pl.cdiv(r, TILE_R) * TILE_R
    B_pad = r_pad * LANE
    y_pad = jnp.pad(y2, ((0, B_pad - B), (0, 0)), constant_values=1.0)
    y_soa = y_pad.T.reshape(6, r_pad, LANE)

    out_soa = linked_sir_rhs_soa(y_soa)                      # (6, r_pad, 128)
    return out_soa.reshape(6, B_pad).T[:B]                   # (B, 6)


def _reference(y):
    y2 = jnp.asarray(y, dtype=jnp.float32).reshape(-1, 6)
    return _linked_sir_rhs_xla(y2)


if __name__ == "__main__":
    key = jax.random.PRNGKey(0)
    k1, k2 = jax.random.split(key)
    t = jnp.float32(0.0)

    # Small batch of linked-SIR state vectors, forced through the Pallas path.
    B1 = 8
    y1 = jax.random.uniform(k1, (B1, 6), dtype=jnp.float32, minval=0.1, maxval=1.0)
    out1 = jax.block_until_ready(linked_sir_forward(t, y1, use_pallas=True))
    assert out1.shape == (B1, 6)
    assert jnp.allclose(out1, _reference(y1), atol=1e-6, rtol=1e-5), "mismatch (B=8)"

    # Non-multiple-of-128 batch: exercises padding + (6, r, 128) slab layout.
    B2 = 300
    y2 = jax.random.uniform(k2, (B2, 6), dtype=jnp.float32, minval=0.1, maxval=1.0)
    out2 = jax.block_until_ready(linked_sir_forward(t, y2, use_pallas=True))
    assert out2.shape == (B2, 6)
    assert jnp.allclose(out2, _reference(y2), atol=1e-6, rtol=1e-5), "mismatch (B=300)"

    # Auto-dispatch path (small B -> fused XLA) stays consistent.
    out3 = jax.block_until_ready(linked_sir_forward(t, y1))
    assert jnp.allclose(out3, _reference(y1), atol=1e-6, rtol=1e-5), "mismatch (auto path)"

    print("KERNEL_OK")
</pallas_src>

<mosaic_0001>
module attributes {stable_mosaic.version = 11 : i64} {
  func.func @_linked_sir_kernel(%arg0: i32, %arg1: memref<6x1x128xf32, #tpu.memory_space<vmem>>, %arg2: memref<6x1x128xf32, #tpu.memory_space<vmem>>) attributes {dimension_semantics = [#tpu.dimension_semantics<parallel>], iteration_bounds = array<i64: 1>, scalar_prefetch = 0 : i64, scratch_operands = 0 : i64, tpu.core_type = #tpu.core_type<tc>, window_params = [{transform_indices = @transform_0, window_bounds = array<i64: 6, 1, 128>}, {transform_indices = @transform_1, window_bounds = array<i64: 6, 1, 128>}]} {
    %c0 = arith.constant 0 : index
    %c0_0 = arith.constant 0 : index
    %c0_1 = arith.constant 0 : index
    %0 = vector.load %arg1[%c0, %c0_0, %c0_1] : memref<6x1x128xf32, #tpu.memory_space<vmem>>, vector<1x1x128xf32>
    %1 = vector.shape_cast %0 : vector<1x1x128xf32> to vector<1x128xf32>
    %c1 = arith.constant 1 : index
    %c0_2 = arith.constant 0 : index
    %c0_3 = arith.constant 0 : index
    %2 = vector.load %arg1[%c1, %c0_2, %c0_3] : memref<6x1x128xf32, #tpu.memory_space<vmem>>, vector<1x1x128xf32>
    %3 = vector.shape_cast %2 : vector<1x1x128xf32> to vector<1x128xf32>
    %c2 = arith.constant 2 : index
    %c0_4 = arith.constant 0 : index
    %c0_5 = arith.constant 0 : index
    %4 = vector.load %arg1[%c2, %c0_4, %c0_5] : memref<6x1x128xf32, #tpu.memory_space<vmem>>, vector<1x1x128xf32>
    %5 = vector.shape_cast %4 : vector<1x1x128xf32> to vector<1x128xf32>
    %c3 = arith.constant 3 : index
    %c0_6 = arith.constant 0 : index
    %c0_7 = arith.constant 0 : index
    %6 = vector.load %arg1[%c3, %c0_6, %c0_7] : memref<6x1x128xf32, #tpu.memory_space<vmem>>, vector<1x1x128xf32>
    %7 = vector.shape_cast %6 : vector<1x1x128xf32> to vector<1x128xf32>
    %c4 = arith.constant 4 : index
    %c0_8 = arith.constant 0 : index
    %c0_9 = arith.constant 0 : index
    %8 = vector.load %arg1[%c4, %c0_8, %c0_9] : memref<6x1x128xf32, #tpu.memory_space<vmem>>, vector<1x1x128xf32>
    %9 = vector.shape_cast %8 : vector<1x1x128xf32> to vector<1x128xf32>
    %c5 = arith.constant 5 : index
    %c0_10 = arith.constant 0 : index
    %c0_11 = arith.constant 0 : index
    %10 = vector.load %arg1[%c5, %c0_10, %c0_11] : memref<6x1x128xf32, #tpu.memory_space<vmem>>, vector<1x1x128xf32>
    %11 = vector.shape_cast %10 : vector<1x1x128xf32> to vector<1x128xf32>
    %12 = arith.addf %1, %3 : vector<1x128xf32>
    %13 = arith.addf %12, %5 : vector<1x128xf32>
    %14 = tpu.reciprocal %13 : vector<1x128xf32> -> vector<1x128xf32>
    %15 = arith.addf %7, %9 : vector<1x128xf32>
    %16 = arith.addf %15, %11 : vector<1x128xf32>
    %17 = tpu.reciprocal %16 : vector<1x128xf32> -> vector<1x128xf32>
    %cst = arith.constant 3.000000e-01 : f32
    %18 = vector.broadcast %cst : f32 to vector<1x128xf32>
    %19 = arith.mulf %18, %1 : vector<1x128xf32>
    %20 = arith.mulf %19, %3 : vector<1x128xf32>
    %21 = arith.mulf %20, %14 : vector<1x128xf32>
    %cst_12 = arith.constant 2.000000e-01 : f32
    %22 = vector.broadcast %cst_12 : f32 to vector<1x128xf32>
    %23 = arith.mulf %22, %7 : vector<1x128xf32>
    %24 = arith.mulf %23, %9 : vector<1x128xf32>
    %25 = arith.mulf %24, %17 : vector<1x128xf32>
    %cst_13 = arith.constant 0.000000e+00 : f32
    %26 = vector.broadcast %cst_13 : f32 to vector<1x128xf32>
    %27 = arith.subf %26, %21 : vector<1x128xf32>
    %cst_14 = arith.constant 0.00999999977 : f32
    %28 = vector.broadcast %cst_14 : f32 to vector<1x128xf32>
    %29 = arith.mulf %28, %1 : vector<1x128xf32>
    %30 = arith.subf %27, %29 : vector<1x128xf32>
    %cst_15 = arith.constant 0.00999999977 : f32
    %31 = vector.broadcast %cst_15 : f32 to vector<1x128xf32>
    %32 = arith.mulf %31, %7 : vector<1x128xf32>
    %33 = arith.addf %30, %32 : vector<1x128xf32>
    %c0_16 = arith.constant 0 : index
    %c0_17 = arith.constant 0 : index
    %c0_18 = arith.constant 0 : index
    %34 = vector.load %arg2[%c0_16, %c0_17, %c0_18] : memref<6x1x128xf32, #tpu.memory_space<vmem>>, vector<1x1x128xf32>
    %35 = vector.shape_cast %34 : vector<1x1x128xf32> to vector<1x128xf32>
    %36 = vector.shape_cast %33 : vector<1x128xf32> to vector<1x1x128xf32>
    tpu.vector_store %arg2[%c0_16, %c0_17, %c0_18], %36 {strides = array<i32>} : memref<6x1x128xf32, #tpu.memory_space<vmem>>, vector<1x1x128xf32>,
    %cst_19 = arith.constant 1.000000e-01 : f32
    %37 = vector.broadcast %cst_19 : f32 to vector<1x128xf32>
    %38 = arith.mulf %37, %3 : vector<1x128xf32>
    %39 = arith.subf %21, %38 : vector<1x128xf32>
    %cst_20 = arith.constant 0.00999999977 : f32
    %40 = vector.broadcast %cst_20 : f32 to vector<1x128xf32>
    %41 = arith.mulf %40, %3 : vector<1x128xf32>
    %42 = arith.subf %39, %41 : vector<1x128xf32>
    %cst_21 = arith.constant 0.00999999977 : f32
    %43 = vector.broadcast %cst_21 : f32 to vector<1x128xf32>
    %44 = arith.mulf %43, %9 : vector<1x128xf32>
    %45 = arith.addf %42, %44 : vector<1x128xf32>
    %c1_22 = arith.constant 1 : index
    %c0_23 = arith.constant 0 : index
    %c0_24 = arith.constant 0 : index
    %46 = vector.load %arg2[%c1_22, %c0_23, %c0_24] : memref<6x1x128xf32, #tpu.memory_space<vmem>>, vector<1x1x128xf32>
    %47 = vector.shape_cast %46 : vector<1x1x128xf32> to vector<1x128xf32>
    %48 = vector.shape_cast %45 : vector<1x128xf32> to vector<1x1x128xf32>
    tpu.vector_store %arg2[%c1_22, %c0_23, %c0_24], %48 {strides = array<i32>} : memref<6x1x128xf32, #tpu.memory_space<vmem>>, vector<1x1x128xf32>,
    %cst_25 = arith.constant 1.000000e-01 : f32
    %49 = vector.broadcast %cst_25 : f32 to vector<1x128xf32>
    %50 = arith.mulf %49, %3 : vector<1x128xf32>
    %cst_26 = arith.constant 0.00999999977 : f32
    %51 = vector.broadcast %cst_26 : f32 to vector<1x128xf32>
    %52 = arith.mulf %51, %5 : vector<1x128xf32>
    %53 = arith.subf %50, %52 : vector<1x128xf32>
    %cst_27 = arith.constant 0.00999999977 : f32
    %54 = vector.broadcast %cst_27 : f32 to vector<1x128xf32>
    %55 = arith.mulf %54, %11 : vector<1x128xf32>
    %56 = arith.addf %53, %55 : vector<1x128xf32>
    %c2_28 = arith.constant 2 : index
    %c0_29 = arith.constant 0 : index
    %c0_30 = arith.constant 0 : index
    %57 = vector.load %arg2[%c2_28, %c0_29, %c0_30] : memref<6x1x128xf32, #tpu.memory_space<vmem>>, vector<1x1x128xf32>
    %58 = vector.shape_cast %57 : vector<1x1x128xf32> to vector<1x128xf32>
    %59 = vector.shape_cast %56 : vector<1x128xf32> to vector<1x1x128xf32>
    tpu.vector_store %arg2[%c2_28, %c0_29, %c0_30], %59 {strides = array<i32>} : memref<6x1x128xf32, #tpu.memory_space<vmem>>, vector<1x1x128xf32>,
    %cst_31 = arith.constant 0.000000e+00 : f32
    %60 = vector.broadcast %cst_31 : f32 to vector<1x128xf32>
    %61 = arith.subf %60, %25 : vector<1x128xf32>
    %cst_32 = arith.constant 0.00999999977 : f32
    %62 = vector.broadcast %cst_32 : f32 to vector<1x128xf32>
    %63 = arith.mulf %62, %7 : vector<1x128xf32>
    %64 = arith.subf %61, %63 : vector<1x128xf32>
    %cst_33 = arith.constant 0.00999999977 : f32
    %65 = vector.broadcast %cst_33 : f32 to vector<1x128xf32>
    %66 = arith.mulf %65, %1 : vector<1x128xf32>
    %67 = arith.addf %64, %66 : vector<1x128xf32>
    %c3_34 = arith.constant 3 : index
    %c0_35 = arith.constant 0 : index
    %c0_36 = arith.constant 0 : index
    %68 = vector.load %arg2[%c3_34, %c0_35, %c0_36] : memref<6x1x128xf32, #tpu.memory_space<vmem>>, vector<1x1x128xf32>
    %69 = vector.shape_cast %68 : vector<1x1x128xf32> to vector<1x128xf32>
    %70 = vector.shape_cast %67 : vector<1x128xf32> to vector<1x1x128xf32>
    tpu.vector_store %arg2[%c3_34, %c0_35, %c0_36], %70 {strides = array<i32>} : memref<6x1x128xf32, #tpu.memory_space<vmem>>, vector<1x1x128xf32>,
    %cst_37 = arith.constant 1.000000e-01 : f32
    %71 = vector.broadcast %cst_37 : f32 to vector<1x128xf32>
    %72 = arith.mulf %71, %9 : vector<1x128xf32>
    %73 = arith.subf %25, %72 : vector<1x128xf32>
    %cst_38 = arith.constant 0.00999999977 : f32
    %74 = vector.broadcast %cst_38 : f32 to vector<1x128xf32>
    %75 = arith.mulf %74, %9 : vector<1x128xf32>
    %76 = arith.subf %73, %75 : vector<1x128xf32>
    %cst_39 = arith.constant 0.00999999977 : f32
    %77 = vector.broadcast %cst_39 : f32 to vector<1x128xf32>
    %78 = arith.mulf %77, %3 : vector<1x128xf32>
    %79 = arith.addf %76, %78 : vector<1x128xf32>
    %c4_40 = arith.constant 4 : index
    %c0_41 = arith.constant 0 : index
    %c0_42 = arith.constant 0 : index
    %80 = vector.load %arg2[%c4_40, %c0_41, %c0_42] : memref<6x1x128xf32, #tpu.memory_space<vmem>>, vector<1x1x128xf32>
    %81 = vector.shape_cast %80 : vector<1x1x128xf32> to vector<1x128xf32>
    %82 = vector.shape_cast %79 : vector<1x128xf32> to vector<1x1x128xf32>
    tpu.vector_store %arg2[%c4_40, %c0_41, %c0_42], %82 {strides = array<i32>} : memref<6x1x128xf32, #tpu.memory_space<vmem>>, vector<1x1x128xf32>,
    %cst_43 = arith.constant 1.000000e-01 : f32
    %83 = vector.broadcast %cst_43 : f32 to vector<1x128xf32>
    %84 = arith.mulf %83, %9 : vector<1x128xf32>
    %cst_44 = arith.constant 0.00999999977 : f32
    %85 = vector.broadcast %cst_44 : f32 to vector<1x128xf32>
    %86 = arith.mulf %85, %11 : vector<1x128xf32>
    %87 = arith.subf %84, %86 : vector<1x128xf32>
    %cst_45 = arith.constant 0.00999999977 : f32
    %88 = vector.broadcast %cst_45 : f32 to vector<1x128xf32>
    %89 = arith.mulf %88, %5 : vector<1x128xf32>
    %90 = arith.addf %87, %89 : vector<1x128xf32>
    %c5_46 = arith.constant 5 : index
    %c0_47 = arith.constant 0 : index
    %c0_48 = arith.constant 0 : index
    %91 = vector.load %arg2[%c5_46, %c0_47, %c0_48] : memref<6x1x128xf32, #tpu.memory_space<vmem>>, vector<1x1x128xf32>
    %92 = vector.shape_cast %91 : vector<1x1x128xf32> to vector<1x128xf32>
    %93 = vector.shape_cast %90 : vector<1x128xf32> to vector<1x1x128xf32>
    tpu.vector_store %arg2[%c5_46, %c0_47, %c0_48], %93 {strides = array<i32>} : memref<6x1x128xf32, #tpu.memory_space<vmem>>, vector<1x1x128xf32>,
    return
  }
  func.func @transform_0(%arg0: i32) -> (i32, i32, i32) {
    %c0_i32 = arith.constant 0 : i32
    %c0_i32_0 = arith.constant 0 : i32
    %c0_i32_1 = arith.constant 0 : i32
    return %c0_i32, %arg0, %c0_i32_0 : i32, i32, i32
  }
  func.func @transform_1(%arg0: i32) -> (i32, i32, i32) {
    %c0_i32 = arith.constant 0 : i32
    %c0_i32_0 = arith.constant 0 : i32
    %c0_i32_1 = arith.constant 0 : i32
    return %c0_i32, %arg0, %c0_i32_0 : i32, i32, i32
  }
}

</mosaic_0001>

<bundles_post_ra>
// kernel: linked_sir_forward.1
= control target key start
LH: loop header
LB: loop body
LE: loop exit
PB: predicated region body
PF: predicated region fallthrough
CT: control target
= control target key end

     0   :  { %s130_s0 = inlined_call_operand.vmem [shape: f32[6,1,128], index: 0, kind: input, shape index: {}]   ;;  %s131_s1 = inlined_call_operand.vmem [shape: f32[6,1,128], index: 1, kind: output, shape index: {}]  }
   0x1   :  { %v8_v0 = vld [vmem:[%s130_s0] sm:$0x1]  ;;  %v70_v1 = vld [vmem:[%s130_s0 + $0x1] sm:$0x1]  ;;  %v71_v2 = vld [vmem:[%s130_s0 + $0x2] sm:$0x1] }
   0x2   :  { %v72_v3 = vld [vmem:[%s130_s0 + $0x3] sm:$0x1]  ;;  %v19_v4 = vadd.f32 %v70_v1, %v8_v0  ;;  %v73_v5 = vld [vmem:[%s130_s0 + $0x4] sm:$0x1]  ;;  %v74_v7 = vld [vmem:[%s130_s0 + $0x5] sm:$0x1] }
   0x3   :  { %v37_v8 = vmul.f32 0.1, %v70_v1  ;;  %v22_v9 = vadd.f32 %v73_v5, %v72_v3  ;;  %v45_v10 = vmul.f32 0.01, %v71_v2  ;;  %v47_v11 = vmul.f32 0.01, %v74_v7 }
   0x4   :  { %v20_v6 = vadd.f32 %v71_v2, %v19_v4  ;;  %v56_v12 = vmul.f32 0.1, %v73_v5  ;;  %v25_v18 = vmul.f32 0.3, %v8_v0  ;;  %v28_v19 = vmul.f32 0.2, %v72_v3 }
   0x5   :  { %v23_v13 = vadd.f32 %v74_v7, %v22_v9  ;;  %v46_v14 = vsub.f32 %v37_v8, %v45_v10  ;;  %v32_v24 = vmul.f32 0.01, %v8_v0  ;;  %v39_v25 = vmul.f32 0.01, %v70_v1 }
   0x6   :  { %80 = vrcp.f32 %v20_v6  ;;  %v62_v15 = vsub.f32 %v56_v12, %v47_v11  ;;  %v26_v20 = vmul.f32 %v70_v1, %v25_v18  ;;  %v29_v22 = vmul.f32 %v73_v5, %v28_v19 }
   0x7   :  { %82 = vrcp.f32 %v23_v13  ;;  %v48_v16 = vadd.f32 %v47_v11, %v46_v14  ;;  %v34_v29 = vmul.f32 0.01, %v72_v3  ;;  %v41_v30 = vmul.f32 0.01, %v73_v5 }
   0x8   :  { %v63_v17 = vadd.f32 %v62_v15, %v45_v10 }
   0x9   :  { %76 = vst [vmem:[%s131_s1 + $0x2] sm:$0x1] %v48_v16 }
   0xa   :  { %79 = vst [vmem:[%s131_s1 + $0x5] sm:$0x1] %v63_v17 }
  0x13   :  { %v81_v21 = vpop.eup %80 }
  0x14   :  { %v27_v23 = vmul.f32 %v81_v21, %v26_v20  ;;  %v83_v26 = vpop.eup %82 }
  0x15   :  { %v30_v31 = vmul.f32 %v83_v26, %v29_v22 }
  0x16   :  { %v31_v27 = vsub.f32 0.0, %v27_v23  ;;  %v38_v28 = vsub.f32 %v27_v23, %v37_v8 }
  0x17   :  { %v51_v34 = vsub.f32 0.0, %v30_v31  ;;  %v57_v35 = vsub.f32 %v30_v31, %v56_v12 }
  0x18   :  { %v33_v32 = vsub.f32 %v31_v27, %v32_v24  ;;  %v40_v33 = vsub.f32 %v38_v28, %v39_v25 }
  0x19   :  { %v52_v38 = vsub.f32 %v51_v34, %v34_v29  ;;  %v58_v39 = vsub.f32 %v57_v35, %v41_v30 }
  0x1a   :  { %v35_v36 = vadd.f32 %v34_v29, %v33_v32  ;;  %v42_v37 = vadd.f32 %v41_v30, %v40_v33 }
  0x1b   :  { %v53_v40 = vadd.f32 %v52_v38, %v32_v24  ;;  %v59_v41 = vadd.f32 %v58_v39, %v39_v25 }
  0x1c   :  { %36 = vst [vmem:[%s131_s1] sm:$0x1] %v35_v36  ;;  %75 = vst [vmem:[%s131_s1 + $0x1] sm:$0x1] %v42_v37 }
  0x1d   :  { %77 = vst [vmem:[%s131_s1 + $0x3] sm:$0x1] %v53_v40  ;;  %78 = vst [vmem:[%s131_s1 + $0x4] sm:$0x1] %v59_v41 }

</bundles_post_ra>
